<compile_context>
chip_gen: v6e
topology: v6e:2x2x1
jax: 0.10.0
libtpu: 0.0.40
codegen_flags: <defaults>
</compile_context>

<pallas_src>
import jax
import jax.numpy as jnp
from jax.experimental import pallas as pl
from jax.experimental.pallas import tpu as pltpu

IN_FEATURES = 10
OUT_FEATURES = 20
MIN_VALUE = -0.5
MAX_VALUE = 0.5


def linear_clamp_kernel(x_ref, w_ref, b_ref, o_ref):
    # x_ref: (B, IN) f32, w_ref: (IN, OUT) f32, b_ref: (1, OUT) f32, o_ref: (B, OUT)
    x = x_ref[...]                                          # (B, IN)
    B = x.shape[0]
    # start accumulator from the broadcast bias (no zeros + add)
    acc = jnp.broadcast_to(b_ref[...], (B, OUT_FEATURES)).astype(jnp.float32)
    # K=10 -> ten VPU broadcast-FMAs instead of a <0.2%-utilized MXU matmul
    for k in range(IN_FEATURES):
        acc = acc + x[:, k:k + 1] * w_ref[k:k + 1, :]
    # clamp_min then clamp_max (matches torch.clamp_min / clamp_max order)
    acc = jnp.maximum(acc, MIN_VALUE)
    acc = jnp.minimum(acc, MAX_VALUE)
    o_ref[...] = acc.astype(o_ref.dtype)


def prepare_params(w, b):
    """One-time parameter prep (hoisted out of the per-call path).

    w: (OUT, IN) torch layout -> w_t: (IN, OUT); b: (OUT,) -> (1, OUT)."""
    w_t = jnp.asarray(w.T, dtype=jnp.float32)               # (IN, OUT)
    b_row = jnp.asarray(b, dtype=jnp.float32).reshape(1, OUT_FEATURES)
    return w_t, b_row


@jax.jit
def linear_clamp(x, w_t, b_row):
    """x: (B, IN) f32, w_t: (IN, OUT) f32, b_row: (1, OUT) f32 -> (B, OUT)."""
    B = x.shape[0]
    return pl.pallas_call(
        linear_clamp_kernel,
        out_shape=jax.ShapeDtypeStruct((B, OUT_FEATURES), jnp.float32),
        in_specs=[
            pl.BlockSpec(memory_space=pltpu.MemorySpace.VMEM),
            pl.BlockSpec(memory_space=pltpu.MemorySpace.VMEM),
            pl.BlockSpec(memory_space=pltpu.MemorySpace.VMEM),
        ],
        out_specs=pl.BlockSpec(memory_space=pltpu.MemorySpace.VMEM),
    )(x, w_t, b_row)


def reference(x, w, b):
    y = x @ w.T + b
    return jnp.clip(y, MIN_VALUE, MAX_VALUE)


if __name__ == "__main__":
    key = jax.random.PRNGKey(0)
    kx, kw, kb = jax.random.split(key, 3)

    # input like torch.randn(2, 10)
    x = jax.random.normal(kx, (2, IN_FEATURES), dtype=jnp.float32)

    # deterministic init mimicking nn.Linear(10, 20): U(-1/sqrt(in), 1/sqrt(in))
    bound = 1.0 / (IN_FEATURES ** 0.5)
    w = jax.random.uniform(kw, (OUT_FEATURES, IN_FEATURES),
                           minval=-bound, maxval=bound, dtype=jnp.float32)
    b = jax.random.uniform(kb, (OUT_FEATURES,),
                           minval=-bound, maxval=bound, dtype=jnp.float32)

    # one-time param prep (transpose / reshape live outside the call path)
    w_t, b_row = prepare_params(w, b)

    out = linear_clamp(x, w_t, b_row)
    out = jax.block_until_ready(out)

    ref = reference(x, w, b)
    assert out.shape == (2, OUT_FEATURES)
    assert jnp.allclose(out, ref, atol=1e-5, rtol=1e-5)

    print("KERNEL_OK")
</pallas_src>

<mosaic_0001>
module attributes {stable_mosaic.version = 11 : i64} {
  func.func @linear_clamp_kernel(%arg0: memref<2x10xf32, #tpu.memory_space<vmem>>, %arg1: memref<10x20xf32, #tpu.memory_space<vmem>>, %arg2: memref<1x20xf32, #tpu.memory_space<vmem>>, %arg3: memref<2x20xf32, #tpu.memory_space<vmem>>) attributes {dimension_semantics = [], scalar_prefetch = 0 : i64, scratch_operands = 0 : i64, tpu.core_type = #tpu.core_type<tc>} {
    %c0 = arith.constant 0 : index
    %c0_0 = arith.constant 0 : index
    %0 = vector.load %arg0[%c0, %c0_0] : memref<2x10xf32, #tpu.memory_space<vmem>>, vector<2x10xf32>
    %c0_1 = arith.constant 0 : index
    %c0_2 = arith.constant 0 : index
    %1 = vector.load %arg2[%c0_1, %c0_2] : memref<1x20xf32, #tpu.memory_space<vmem>>, vector<1x20xf32>
    %2 = vector.shape_cast %1 : vector<1x20xf32> to vector<1x20xf32>
    %3 = vector.broadcast %2 : vector<1x20xf32> to vector<2x20xf32>
    %4 = vector.extract_strided_slice %0 {offsets = [0, 0], sizes = [2, 1], strides = [1, 1]} : vector<2x10xf32> to vector<2x1xf32>
    %c0_3 = arith.constant 0 : index
    %c0_4 = arith.constant 0 : index
    %5 = vector.load %arg1[%c0_3, %c0_4] : memref<10x20xf32, #tpu.memory_space<vmem>>, vector<1x20xf32>
    %6 = vector.broadcast %4 : vector<2x1xf32> to vector<2x20xf32>
    %7 = vector.broadcast %5 : vector<1x20xf32> to vector<2x20xf32>
    %8 = arith.mulf %6, %7 : vector<2x20xf32>
    %9 = arith.addf %3, %8 : vector<2x20xf32>
    %10 = vector.extract_strided_slice %0 {offsets = [0, 1], sizes = [2, 1], strides = [1, 1]} : vector<2x10xf32> to vector<2x1xf32>
    %c1 = arith.constant 1 : index
    %c0_5 = arith.constant 0 : index
    %11 = vector.load %arg1[%c1, %c0_5] : memref<10x20xf32, #tpu.memory_space<vmem>>, vector<1x20xf32>
    %12 = vector.broadcast %10 : vector<2x1xf32> to vector<2x20xf32>
    %13 = vector.broadcast %11 : vector<1x20xf32> to vector<2x20xf32>
    %14 = arith.mulf %12, %13 : vector<2x20xf32>
    %15 = arith.addf %9, %14 : vector<2x20xf32>
    %16 = vector.extract_strided_slice %0 {offsets = [0, 2], sizes = [2, 1], strides = [1, 1]} : vector<2x10xf32> to vector<2x1xf32>
    %c2 = arith.constant 2 : index
    %c0_6 = arith.constant 0 : index
    %17 = vector.load %arg1[%c2, %c0_6] : memref<10x20xf32, #tpu.memory_space<vmem>>, vector<1x20xf32>
    %18 = vector.broadcast %16 : vector<2x1xf32> to vector<2x20xf32>
    %19 = vector.broadcast %17 : vector<1x20xf32> to vector<2x20xf32>
    %20 = arith.mulf %18, %19 : vector<2x20xf32>
    %21 = arith.addf %15, %20 : vector<2x20xf32>
    %22 = vector.extract_strided_slice %0 {offsets = [0, 3], sizes = [2, 1], strides = [1, 1]} : vector<2x10xf32> to vector<2x1xf32>
    %c3 = arith.constant 3 : index
    %c0_7 = arith.constant 0 : index
    %23 = vector.load %arg1[%c3, %c0_7] : memref<10x20xf32, #tpu.memory_space<vmem>>, vector<1x20xf32>
    %24 = vector.broadcast %22 : vector<2x1xf32> to vector<2x20xf32>
    %25 = vector.broadcast %23 : vector<1x20xf32> to vector<2x20xf32>
    %26 = arith.mulf %24, %25 : vector<2x20xf32>
    %27 = arith.addf %21, %26 : vector<2x20xf32>
    %28 = vector.extract_strided_slice %0 {offsets = [0, 4], sizes = [2, 1], strides = [1, 1]} : vector<2x10xf32> to vector<2x1xf32>
    %c4 = arith.constant 4 : index
    %c0_8 = arith.constant 0 : index
    %29 = vector.load %arg1[%c4, %c0_8] : memref<10x20xf32, #tpu.memory_space<vmem>>, vector<1x20xf32>
    %30 = vector.broadcast %28 : vector<2x1xf32> to vector<2x20xf32>
    %31 = vector.broadcast %29 : vector<1x20xf32> to vector<2x20xf32>
    %32 = arith.mulf %30, %31 : vector<2x20xf32>
    %33 = arith.addf %27, %32 : vector<2x20xf32>
    %34 = vector.extract_strided_slice %0 {offsets = [0, 5], sizes = [2, 1], strides = [1, 1]} : vector<2x10xf32> to vector<2x1xf32>
    %c5 = arith.constant 5 : index
    %c0_9 = arith.constant 0 : index
    %35 = vector.load %arg1[%c5, %c0_9] : memref<10x20xf32, #tpu.memory_space<vmem>>, vector<1x20xf32>
    %36 = vector.broadcast %34 : vector<2x1xf32> to vector<2x20xf32>
    %37 = vector.broadcast %35 : vector<1x20xf32> to vector<2x20xf32>
    %38 = arith.mulf %36, %37 : vector<2x20xf32>
    %39 = arith.addf %33, %38 : vector<2x20xf32>
    %40 = vector.extract_strided_slice %0 {offsets = [0, 6], sizes = [2, 1], strides = [1, 1]} : vector<2x10xf32> to vector<2x1xf32>
    %c6 = arith.constant 6 : index
    %c0_10 = arith.constant 0 : index
    %41 = vector.load %arg1[%c6, %c0_10] : memref<10x20xf32, #tpu.memory_space<vmem>>, vector<1x20xf32>
    %42 = vector.broadcast %40 : vector<2x1xf32> to vector<2x20xf32>
    %43 = vector.broadcast %41 : vector<1x20xf32> to vector<2x20xf32>
    %44 = arith.mulf %42, %43 : vector<2x20xf32>
    %45 = arith.addf %39, %44 : vector<2x20xf32>
    %46 = vector.extract_strided_slice %0 {offsets = [0, 7], sizes = [2, 1], strides = [1, 1]} : vector<2x10xf32> to vector<2x1xf32>
    %c7 = arith.constant 7 : index
    %c0_11 = arith.constant 0 : index
    %47 = vector.load %arg1[%c7, %c0_11] : memref<10x20xf32, #tpu.memory_space<vmem>>, vector<1x20xf32>
    %48 = vector.broadcast %46 : vector<2x1xf32> to vector<2x20xf32>
    %49 = vector.broadcast %47 : vector<1x20xf32> to vector<2x20xf32>
    %50 = arith.mulf %48, %49 : vector<2x20xf32>
    %51 = arith.addf %45, %50 : vector<2x20xf32>
    %52 = vector.extract_strided_slice %0 {offsets = [0, 8], sizes = [2, 1], strides = [1, 1]} : vector<2x10xf32> to vector<2x1xf32>
    %c8 = arith.constant 8 : index
    %c0_12 = arith.constant 0 : index
    %53 = vector.load %arg1[%c8, %c0_12] : memref<10x20xf32, #tpu.memory_space<vmem>>, vector<1x20xf32>
    %54 = vector.broadcast %52 : vector<2x1xf32> to vector<2x20xf32>
    %55 = vector.broadcast %53 : vector<1x20xf32> to vector<2x20xf32>
    %56 = arith.mulf %54, %55 : vector<2x20xf32>
    %57 = arith.addf %51, %56 : vector<2x20xf32>
    %58 = vector.extract_strided_slice %0 {offsets = [0, 9], sizes = [2, 1], strides = [1, 1]} : vector<2x10xf32> to vector<2x1xf32>
    %c9 = arith.constant 9 : index
    %c0_13 = arith.constant 0 : index
    %59 = vector.load %arg1[%c9, %c0_13] : memref<10x20xf32, #tpu.memory_space<vmem>>, vector<1x20xf32>
    %60 = vector.broadcast %58 : vector<2x1xf32> to vector<2x20xf32>
    %61 = vector.broadcast %59 : vector<1x20xf32> to vector<2x20xf32>
    %62 = arith.mulf %60, %61 : vector<2x20xf32>
    %63 = arith.addf %57, %62 : vector<2x20xf32>
    %cst = arith.constant -5.000000e-01 : f32
    %64 = vector.broadcast %cst : f32 to vector<2x20xf32>
    %65 = arith.maximumf %63, %64 : vector<2x20xf32>
    %cst_14 = arith.constant 5.000000e-01 : f32
    %66 = vector.broadcast %cst_14 : f32 to vector<2x20xf32>
    %67 = arith.minimumf %65, %66 : vector<2x20xf32>
    %c0_15 = arith.constant 0 : index
    %c0_16 = arith.constant 0 : index
    %68 = vector.load %arg3[%c0_15, %c0_16] : memref<2x20xf32, #tpu.memory_space<vmem>>, vector<2x20xf32>
    tpu.vector_store %arg3[%c0_15, %c0_16], %67 {strides = array<i32>} : memref<2x20xf32, #tpu.memory_space<vmem>>, vector<2x20xf32>,
    return
  }
}

</mosaic_0001>

<bundles_post_ra>
// kernel: linear_clamp.1
= control target key start
LH: loop header
LB: loop body
LE: loop exit
PB: predicated region body
PF: predicated region fallthrough
CT: control target
= control target key end

     0   :  { %8 = vsyncpa [#allocation3], 0  ;;  %s331_s0 = inlined_call_operand.hbm [shape: f32[2,10], index: 0, kind: input, shape index: {}]   ;;  %s332_s1 = inlined_call_operand.hbm [shape: f32[10,20], index: 1, kind: input, shape index: {}]   ;;  %s333_s2 = inlined_call_operand.vmem [shape: f32[1,20], index: 2, kind: input, shape index: {}]   ;;  %s334_s3 = inlined_call_operand.hbm [shape: f32[2,20], index: 3, kind: output, shape index: {}]  }
   0x1   :  { %9 = vsyncpa [#allocation6], 0 }
   0x2   :  { %10 = vsyncpa [#allocation4], 0  ;;  %s284_s12 = smov [#allocation2]   ;;  %s285_s14 = smov [#allocation5]  }
   0x3   :  { %s17_s13 = sshll.u32 %s284_s12, 4  ;;  %s26_s15 = sshll.u32 %s285_s14, 4  ;;  %s18_s13 = int_to_ptr.vmem [resolvable:$true] %s17_s13  ;;  %s27_s15 = int_to_ptr.vmem [resolvable:$true] %s26_s15 }
   0x4   :  { %s226_s16 = scalar_lea.vmem %s18_s13, 32  ;;  %p231_p1 = scmp.lt.s32.totalorder %s18_s13, %s18_s13 }
   0x5   :  { %p227_p0 = scmp.ne.s32.totalorder %s18_s13, %s226_s16  ;;  %p232_p2 = scmp.lt.s32.totalorder %s226_s16, %s226_s16 }
   0x7   :  { %p233_p3 = por %p232_p2, %p231_p1 }
   0x9   :  { %p234_p4 = pnand %p233_p3, %p227_p0 }
   0xb   :  { %237 = shalt.err (!%p234_p4)
}
   0xc   :  { %20 = dma.hbm_to_vmem [thread:$0]  %s331_s0, 32, %s18_s13, [#allocation3]  }
   0xd   :  { %s246_s19 = scalar_lea.vmem %s27_s15, 256  ;;  %p251_p6 = scmp.lt.s32.totalorder %s27_s15, %s27_s15 }
   0xe   :  { %p247_p5 = scmp.ne.s32.totalorder %s27_s15, %s246_s19  ;;  %p252_p7 = scmp.lt.s32.totalorder %s246_s19, %s246_s19 }
  0x10   :  { %p253_p8 = por %p252_p7, %p251_p6 }
  0x12   :  { %p254_p9 = pnand %p253_p8, %p247_p5 }
  0x14   :  { %257 = shalt.err (!%p254_p9)
}
  0x15   :  { %s286_s20 = smov 128   ;;  %s287_s21 = smov 8  }
  0x16   :  { %32 = dma.hbm_to_vmem [thread:$0]  %s332_s1, 256, %s27_s15, [#allocation6], %s286_s20, %s286_s20, %s287_s21  }
  0x17   :  { %278 = dma.done.wait [#allocation3], 32  }
  0x18   :  { %279 = vsyncadd [#allocation3], 4294967264 }
  0x19   :  { %280 = dma.done.wait [#allocation6], 256  }
  0x1a   :  { %281 = vsyncadd [#allocation6], 4294967040  ;;  %v288_v0 = vmov 2   ;;  %v289_v1 = vmov 0   ;;  %v41_v2 = vld [vmem:[#allocation2] sm:$0x3] }
  0x1b   :  { %209 = vset.pattern.permute.xlu1 %v288_v0  ;;  %207 = vset.pattern.permute.xlu0 %v289_v1  ;;  %v290_v3 = vmov 3   ;;  %v291_v4 = vmov 1   ;;  %v292_v5 = vmov 4   ;;  %v293_v6 = vmov 5   ;;  %v181_v11 = vld [vmem:[#allocation5] ss:$0 sm:$0xff] }
  0x1c   :  { %74 = vperm.xlu1 %209, %v41_v2   ;;  %52 = vperm.xlu0 %207, %v41_v2   ;;  %v294_v7 = vmov 6   ;;  %v295_v8 = vmov 8   ;;  %v296_v9 = vmov 7   ;;  %v297_v10 = vmov 9   ;;  %v180_v14 = vld [vmem:[%s333_s2] ss:$0 sm:$0xff] }
  0x1d   :  { %v182_v16 = vld [vmem:[#allocation5 + $0x1] ss:$0 sm:$0xff]  ;;  %v183_v18 = vld [vmem:[#allocation5 + $0x2] ss:$0 sm:$0xff]  ;;  %v184_v22 = vld [vmem:[#allocation5 + $0x3] ss:$0 sm:$0xff] }
  0x1e   :  { %v185_v25 = vld [vmem:[#allocation5 + $0x4] ss:$0 sm:$0xff]  ;;  %v186_v29 = vld [vmem:[#allocation5 + $0x5] ss:$0 sm:$0xff]  ;;  %v187_v35 = vld [vmem:[#allocation5 + $0x6] ss:$0 sm:$0xff] }
  0x1f   :  { %v188_v39 = vld [vmem:[#allocation5 + $0x7] ss:$0 sm:$0xff]  ;;  %v189_v40 = vld [vmem:[#allocation5 + $0x8] ss:$0 sm:$0xff]  ;;  %v190_v47 = vld [vmem:[#allocation5 + $0x9] ss:$0 sm:$0xff] }
  0x20   :  { %210 = vset.pattern.permute.xlu1 %v290_v3  ;;  %208 = vset.pattern.permute.xlu0 %v291_v4  ;;  %s298_s2 = smov [#allocation7]   ;;  %vm162_vm0 = vcmask 156672  }
  0x21   :  { %85 = vperm.xlu1 %210, %v41_v2   ;;  %63 = vperm.xlu0 %208, %v41_v2   ;;  %s170_s24 = sshll.u32 %s298_s2, 4  ;;  %s171_s24 = int_to_ptr.vmem [resolvable:$true] %s170_s24 }
  0x22   :  { %s258_s25 = scalar_lea.vmem %s171_s24, 32  ;;  %p263_p11 = scmp.lt.s32.totalorder %s171_s24, %s171_s24 }
  0x23   :  { %p259_p10 = scmp.ne.s32.totalorder %s171_s24, %s258_s25  ;;  %p264_p12 = scmp.lt.s32.totalorder %s258_s25, %s258_s25 }
  0x25   :  { %211 = vset.pattern.permute.xlu1 %v292_v5  ;;  %212 = vset.pattern.permute.xlu0 %v293_v6  ;;  %p265_p13 = por %p264_p12, %p263_p11 }
  0x26   :  { %96 = vperm.xlu1 %211, %v41_v2   ;;  %107 = vperm.xlu0 %212, %v41_v2  }
  0x27   :  { %p266_p0 = pnand %p265_p13, %p259_p10 }
  0x2a   :  { %213 = vset.pattern.permute.xlu1 %v294_v7  ;;  %215 = vset.pattern.permute.xlu0 %v295_v8 }
  0x2b   :  { %118 = vperm.xlu1 %213, %v41_v2   ;;  %140 = vperm.xlu0 %215, %v41_v2  }
  0x2f   :  { %214 = vset.pattern.permute.xlu1 %v296_v9  ;;  %217 = vset.pattern.permute.xlu0 %v297_v10 }
  0x30   :  { %129 = vperm.xlu1 %214, %v41_v2  }
  0x34   :  { %216 = vset.pattern.permute.xlu1 %v297_v10 }
  0x35   :  { %151 = vperm.xlu1 %216, %v41_v2  }
  0x97   :  { %v75_v12 = vpop.permute.xlu1 %74  ;;  %v53_v13 = vpop.permute.xlu0 %52 }
  0x98   :  { %v59_v15 = vmul.f32 %v181_v11, %v53_v13  ;;  %v81_v23 = vmul.f32 %v183_v18, %v75_v12 }
  0x9a   :  { %v60_v17 = vadd.f32 %v180_v14, %v59_v15 }
  0x9c   :  { %v86_v19 = vpop.permute.xlu1 %85  ;;  %v64_v20 = vpop.permute.xlu0 %63 }
  0x9d   :  { %v70_v21 = vmul.f32 %v182_v16, %v64_v20  ;;  %v92_v26 = vmul.f32 %v184_v22, %v86_v19 }
  0x9f   :  { %v71_v24 = vadd.f32 %v70_v21, %v60_v17 }
  0xa1   :  { %v82_v27 = vadd.f32 %v81_v23, %v71_v24  ;;  %v97_v28 = vpop.permute.xlu1 %96  ;;  %v108_v30 = vpop.permute.xlu0 %107 }
  0xa2   :  { %v103_v31 = vmul.f32 %v185_v25, %v97_v28  ;;  %v114_v33 = vmul.f32 %v186_v29, %v108_v30 }
  0xa3   :  { %v93_v32 = vadd.f32 %v92_v26, %v82_v27 }
  0xa5   :  { %v104_v34 = vadd.f32 %v103_v31, %v93_v32 }
  0xa6   :  { %v119_v36 = vpop.permute.xlu1 %118  ;;  %v141_v41 = vpop.permute.xlu0 %140 }
  0xa7   :  { %v115_v37 = vadd.f32 %v114_v33, %v104_v34  ;;  %v125_v38 = vmul.f32 %v187_v35, %v119_v36  ;;  %v147_v45 = vmul.f32 %v189_v40, %v141_v41 }
  0xa9   :  { %v126_v43 = vadd.f32 %v125_v38, %v115_v37 }
  0xab   :  { %v130_v42 = vpop.permute.xlu1 %129 }
  0xac   :  { %v136_v44 = vmul.f32 %v188_v39, %v130_v42 }
  0xae   :  { %v137_v46 = vadd.f32 %v136_v44, %v126_v43 }
  0xb0   :  { %v148_v48 = vadd.f32 %v147_v45, %v137_v46  ;;  %v152_v49 = vpop.permute.xlu1 %151 }
  0xb1   :  { %v158_v50 = vmul.f32 %v190_v47, %v152_v49 }
  0xb3   :  { %v159_v51 = vadd.f32 %v158_v50, %v148_v48 }
  0xb5   :  { %v191_v52 = vclamps-f32 %v159_v51, 0.5 }
  0xb7   :  { %163 = vst.msk [vmem:[#allocation7] sm:$0x3] %vm162_vm0, %v191_v52 }
  0xb8   :  { %269 = shalt.err (!%p266_p0)
}
  0xb9   :  { %173 = dma.vmem_to_hbm [thread:$0]  %s171_s24, 32, %s334_s3, [#allocation4]  }
  0xba   :  { %282 = dma.done.wait [#allocation4], 32  }
  0xbb   :  { %283 = vsyncadd [#allocation4], 4294967264 }
  0xbc   :  { %177 = vsyncpa [#allocation3], 1 }
  0xbd   :  { %178 = vsyncpa [#allocation6], 1 }
  0xbe   :  { %179 = vsyncpa [#allocation4], 1 }

</bundles_post_ra>
